<compile_context>
chip_gen: v5e
topology: v5e:2x2
jax: 0.10.0
libtpu: 0.0.40
codegen_flags: <defaults>
</compile_context>

<pallas_src>
import jax
import jax.numpy as jnp
from jax.experimental import pallas as pl
from jax.experimental.pallas import tpu as pltpu


def _rope_kernel(pos_ref, inv_ref, cos_ref, sin_ref):
    """One (batch, seq-tile) block.

    pos_ref: (1, TS, 1)   f32 position ids for this tile (column vector)
    inv_ref: (1, half)    f32 inverse frequencies (shared across the grid)
    cos_ref/sin_ref: (1, TS, dim) in the output dtype
    """
    half = inv_ref.shape[-1]

    # Outer product in f32: (TS, 1) * (1, half) -> (TS, half).
    freqs = pos_ref[0] * inv_ref[...]

    # emb = cat(freqs, freqs): cos/sin of emb is just the half-width cos/sin
    # duplicated, so only run the transcendentals on (TS, half).
    c = jnp.cos(freqs).astype(cos_ref.dtype)
    s = jnp.sin(freqs).astype(sin_ref.dtype)

    if half % 128 == 0:
        # Lane-aligned halves: two dense stores per output, no concat copy.
        cos_ref[0, :, :half] = c
        cos_ref[0, :, half:] = c
        sin_ref[0, :, :half] = s
        sin_ref[0, :, half:] = s
    else:
        # head_dim < 256: duplicate in-register (cheap cross-lane copy, XLU has
        # slack) and store full width once per output.
        cos_ref[0] = jnp.concatenate([c, c], axis=-1)
        sin_ref[0] = jnp.concatenate([s, s], axis=-1)


def _pick_seq_tile(S, dim, out_dtype, min_blocks=1, byte_budget=2 << 20):
    """Largest divisor of S that is sublane-aligned and within the byte budget.

    byte_budget ~2 MiB per output tile -> ~8 MiB live VMEM with 2 outputs x 2
    pipeline buffers, safe on v7x (64 MiB physical / 32 MiB default scoped)
    while keeping per-grid-step overhead well amortized.
    """
    itemsize = jnp.dtype(out_dtype).itemsize
    pack = max(8, 32 // itemsize)  # f32: 8, bf16/f16: 16, int8/fp8: 32 sublanes
    budget_rows = max(pack, byte_budget // max(1, dim * itemsize))
    target = min(S, budget_rows)
    if min_blocks > 1:
        # Make sure at least `min_blocks` grid blocks exist for core sharding.
        target = min(target, max(pack, S // min_blocks))
    if target >= S and min_blocks <= 1:
        return S
    for cand in range(target, pack - 1, -1):
        if S % cand == 0 and cand % pack == 0:
            return cand
    return S  # no aligned divisor found; fall back to full sequence per block


def boss_rotary_embedding(x, position_ids, dim, base=10000.0, seq_tile=None):
    """Returns (cos, sin), each [B, S, dim] in x.dtype (matches the PyTorch module)."""
    assert dim % 2 == 0
    B, S = position_ids.shape
    half = dim // 2
    out_dtype = x.dtype
    itemsize = jnp.dtype(out_dtype).itemsize
    pack = max(8, 32 // itemsize)

    # Deterministic buffer, identical to BoSsRotaryEmbedding.__init__.
    inv_freq = 1.0 / (base ** (jnp.arange(0, dim, 2, dtype=jnp.float32) / dim))
    inv_freq = inv_freq.reshape(1, half)  # (1, half) f32

    # (B, S, 1) column layout -> kernel does a plain broadcast multiply.
    pos_f32 = position_ids.astype(jnp.float32)[:, :, None]

    if seq_tile is None:
        # If B == 1, try to create >= 2 sequence blocks so megacore has work.
        ts = _pick_seq_tile(S, dim, out_dtype, min_blocks=(2 if B == 1 else 1))
    else:
        ts = int(seq_tile)
    assert S % ts == 0 and (ts == S or ts % pack == 0), (S, ts, pack)
    n_s = S // ts

    # 2 outputs x 2 pipeline buffers x tile + f32 intermediates + slack,
    # capped below v7x's 64 MiB physical per-TC VMEM.
    vmem_bytes = 4 * ts * dim * itemsize + 4 * ts * half * 4 + (2 << 20)
    vmem_limit = int(min(max(vmem_bytes, 8 << 20), 60 << 20))

    cos, sin = pl.pallas_call(
        _rope_kernel,
        out_shape=(
            jax.ShapeDtypeStruct((B, S, dim), out_dtype),
            jax.ShapeDtypeStruct((B, S, dim), out_dtype),
        ),
        grid_spec=pltpu.PrefetchScalarGridSpec(
            num_scalar_prefetch=0,
            grid=(B, n_s),
            in_specs=[
                pl.BlockSpec((1, ts, 1), lambda b, s: (b, s, 0)),   # positions
                pl.BlockSpec((1, half), lambda b, s: (0, 0)),       # shared inv_freq
            ],
            out_specs=[
                pl.BlockSpec((1, ts, dim), lambda b, s: (b, s, 0)),
                pl.BlockSpec((1, ts, dim), lambda b, s: (b, s, 0)),
            ],
        ),
        compiler_params=pltpu.CompilerParams(
            dimension_semantics=("parallel", "parallel"),
            vmem_limit_bytes=vmem_limit),
    )(pos_f32, inv_freq)
    return cos, sin


def _reference(x, position_ids, dim, base=10000.0):
    # Pure-JAX reference mirroring the PyTorch forward.
    inv_freq = 1.0 / (base ** (jnp.arange(0, dim, 2, dtype=jnp.float32) / dim))
    freqs = position_ids.astype(jnp.float32)[:, :, None] * inv_freq[None, None, :]
    emb = jnp.concatenate([freqs, freqs], axis=-1)
    return jnp.cos(emb).astype(x.dtype), jnp.sin(emb).astype(x.dtype)


if __name__ == "__main__":
    key = jax.random.PRNGKey(0)
    k1, k2, k3 = jax.random.split(key, 3)

    # Small shape consistent with the module.
    B, S, dim = 2, 8, 32
    x = jax.random.normal(k1, (B, S, dim), dtype=jnp.float32)   # only its dtype is used
    position_ids = jnp.broadcast_to(jnp.arange(S, dtype=jnp.int32)[None, :], (B, S))

    cos, sin = boss_rotary_embedding(x, position_ids, dim)
    jax.block_until_ready((cos, sin))
    cos_r, sin_r = _reference(x, position_ids, dim)
    assert cos.shape == (B, S, dim) and sin.shape == (B, S, dim)
    assert cos.dtype == x.dtype and sin.dtype == x.dtype
    assert jnp.allclose(cos, cos_r, atol=1e-5, rtol=1e-5)
    assert jnp.allclose(sin, sin_r, atol=1e-5, rtol=1e-5)

    # Exercise the tiled (B, S // TS) grid path with a bf16 output dtype.
    B2, S2, dim2 = 2, 1024, 64
    x2 = jax.random.normal(k2, (B2, S2, dim2), dtype=jnp.bfloat16)
    pos2 = jnp.broadcast_to(jnp.arange(S2, dtype=jnp.int32)[None, :], (B2, S2)) * 3
    cos2, sin2 = boss_rotary_embedding(x2, pos2, dim2, seq_tile=256)   # grid (2, 4)
    jax.block_until_ready((cos2, sin2))
    cos2_r, sin2_r = _reference(x2, pos2, dim2)
    assert cos2.dtype == jnp.bfloat16 and sin2.dtype == jnp.bfloat16
    assert jnp.allclose(cos2.astype(jnp.float32), cos2_r.astype(jnp.float32),
                        atol=1e-2, rtol=1e-2)
    assert jnp.allclose(sin2.astype(jnp.float32), sin2_r.astype(jnp.float32),
                        atol=1e-2, rtol=1e-2)

    # Exercise the auto-tile path with 128-aligned halves (two dense half stores)
    # and a single batch (tile picker should still create >= 2 grid blocks).
    B3, S3, dim3 = 1, 512, 256
    x3 = jax.random.normal(k3, (B3, S3, dim3), dtype=jnp.float32)
    pos3 = jnp.arange(S3, dtype=jnp.int32)[None, :]
    cos3, sin3 = boss_rotary_embedding(x3, pos3, dim3)
    jax.block_until_ready((cos3, sin3))
    cos3_r, sin3_r = _reference(x3, pos3, dim3)
    assert jnp.allclose(cos3, cos3_r, atol=1e-5, rtol=1e-5)
    assert jnp.allclose(sin3, sin3_r, atol=1e-5, rtol=1e-5)

    print("KERNEL_OK")
</pallas_src>

<mosaic_0001>
module attributes {stable_mosaic.version = 11 : i64} {
  func.func @_rope_kernel(%arg0: i32, %arg1: i32, %arg2: memref<1x8x1xf32, #tpu.memory_space<vmem>>, %arg3: memref<1x16xf32, #tpu.memory_space<vmem>>, %arg4: memref<1x8x32xf32, #tpu.memory_space<vmem>>, %arg5: memref<1x8x32xf32, #tpu.memory_space<vmem>>) attributes {dimension_semantics = [#tpu.dimension_semantics<parallel>, #tpu.dimension_semantics<parallel>], iteration_bounds = array<i64: 2, 1>, scalar_prefetch = 0 : i64, scratch_operands = 0 : i64, tpu.core_type = #tpu.core_type<tc>, window_params = [{transform_indices = @transform_0, window_bounds = array<i64: 1, 8, 1>}, {pipeline_mode = #tpu.pipeline_mode<synchronous>, transform_indices = @transform_1, window_bounds = array<i64: 1, 16>}, {transform_indices = @transform_2, window_bounds = array<i64: 1, 8, 32>}, {transform_indices = @transform_3, window_bounds = array<i64: 1, 8, 32>}]} {
    %c0 = arith.constant 0 : index
    %c0_0 = arith.constant 0 : index
    %c0_1 = arith.constant 0 : index
    %0 = vector.load %arg2[%c0, %c0_0, %c0_1] : memref<1x8x1xf32, #tpu.memory_space<vmem>>, vector<1x8x1xf32>
    %1 = vector.shape_cast %0 : vector<1x8x1xf32> to vector<8x1xf32>
    %c0_2 = arith.constant 0 : index
    %c0_3 = arith.constant 0 : index
    %2 = vector.load %arg3[%c0_2, %c0_3] : memref<1x16xf32, #tpu.memory_space<vmem>>, vector<1x16xf32>
    %3 = vector.broadcast %1 : vector<8x1xf32> to vector<8x16xf32>
    %4 = vector.broadcast %2 : vector<1x16xf32> to vector<8x16xf32>
    %5 = arith.mulf %3, %4 : vector<8x16xf32>
    %6 = math.cos %5 : vector<8x16xf32>
    %7 = math.sin %5 : vector<8x16xf32>
    %8 = tpu.concatenate %6, %6 in 1 : vector<8x16xf32>, vector<8x16xf32> -> vector<8x32xf32>
    %c0_4 = arith.constant 0 : index
    %c0_5 = arith.constant 0 : index
    %c0_6 = arith.constant 0 : index
    %9 = vector.load %arg4[%c0_4, %c0_5, %c0_6] : memref<1x8x32xf32, #tpu.memory_space<vmem>>, vector<1x8x32xf32>
    %10 = vector.shape_cast %9 : vector<1x8x32xf32> to vector<8x32xf32>
    %11 = vector.shape_cast %8 : vector<8x32xf32> to vector<1x8x32xf32>
    tpu.vector_store %arg4[%c0_4, %c0_5, %c0_6], %11 {strides = array<i32>} : memref<1x8x32xf32, #tpu.memory_space<vmem>>, vector<1x8x32xf32>,
    %12 = tpu.concatenate %7, %7 in 1 : vector<8x16xf32>, vector<8x16xf32> -> vector<8x32xf32>
    %c0_7 = arith.constant 0 : index
    %c0_8 = arith.constant 0 : index
    %c0_9 = arith.constant 0 : index
    %13 = vector.load %arg5[%c0_7, %c0_8, %c0_9] : memref<1x8x32xf32, #tpu.memory_space<vmem>>, vector<1x8x32xf32>
    %14 = vector.shape_cast %13 : vector<1x8x32xf32> to vector<8x32xf32>
    %15 = vector.shape_cast %12 : vector<8x32xf32> to vector<1x8x32xf32>
    tpu.vector_store %arg5[%c0_7, %c0_8, %c0_9], %15 {strides = array<i32>} : memref<1x8x32xf32, #tpu.memory_space<vmem>>, vector<1x8x32xf32>,
    return
  }
  func.func @transform_0(%arg0: i32, %arg1: i32) -> (i32, i32, i32) {
    %c0_i32 = arith.constant 0 : i32
    %c0_i32_0 = arith.constant 0 : i32
    return %arg0, %arg1, %c0_i32 : i32, i32, i32
  }
  func.func @transform_1(%arg0: i32, %arg1: i32) -> (i32, i32) {
    %c0_i32 = arith.constant 0 : i32
    %c0_i32_0 = arith.constant 0 : i32
    %c0_i32_1 = arith.constant 0 : i32
    return %c0_i32, %c0_i32_0 : i32, i32
  }
  func.func @transform_2(%arg0: i32, %arg1: i32) -> (i32, i32, i32) {
    %c0_i32 = arith.constant 0 : i32
    %c0_i32_0 = arith.constant 0 : i32
    return %arg0, %arg1, %c0_i32 : i32, i32, i32
  }
  func.func @transform_3(%arg0: i32, %arg1: i32) -> (i32, i32, i32) {
    %c0_i32 = arith.constant 0 : i32
    %c0_i32_0 = arith.constant 0 : i32
    return %arg0, %arg1, %c0_i32 : i32, i32, i32
  }
}

</mosaic_0001>

<bundles_post_ra>
// kernel: tpu_custom_call.1
= control target key start
LH: loop header
LB: loop body
LE: loop exit
PB: predicated region body
PF: predicated region fallthrough
CT: control target
= control target key end

     0   :  { %9 = vsyncpa [#allocation3], 0  ;;  %s1096_s0 = inlined_call_operand.vmem [shape: f32[2,8,1], index: 0, kind: input, shape index: {}]   ;;  %s1097_s1 = inlined_call_operand.vmem [shape: f32[1,16], index: 1, kind: input, shape index: {}]   ;;  %s1098_s2 = inlined_call_operand.hbm [shape: f32[2,8,32], index: 2, kind: output, shape index: {0}]   ;;  %s1099_s3 = inlined_call_operand.hbm [shape: f32[2,8,32], index: 3, kind: output, shape index: {1}]  }
   0x1   :  { %11 = vsyncpa [#allocation3 + $0x1], 0 }
   0x2   :  { %12 = vsyncpa [#allocation5], 0 }
   0x3   :  { %14 = vsyncpa [#allocation5 + $0x1], 0  ;;  %s910_s12 = smov 0   ;;  %s912_s13 = smov 0  }
   0x4   :  { %s914_s14 = smov 0   ;;  %s916_s15 = smov 0  }
   0x5   :  { %s918_s16 = smov 0   ;;  %s920_s17 = smov 0  }
   0x6 LB: > { %s680_s18 = sadd.s32 4294967295, %s880_s17   ;;  %s681_s19 = sadd.s32 4294967294, %s880_s17   ;;  %s880_s17 = sphi %s920_s17, %s20_s17   ;;  %s876_s16 = sphi %s918_s16, %s1106_s16   ;;  %s872_s15 = sphi %s916_s15, %s1105_s15   ;;  %s868_s14 = sphi %s914_s14, %s1104_s14   ;;  %s864_s13 = sphi %s912_s13, %s1103_s13   ;;  %s860_s12 = sphi %s910_s12, %s1102_s12  }
   0x7   : > { %s32_s20 = sadd.s32 1, %s876_s16  ;;  %s90_s21 = sadd.s32 1, %s868_s14 }
   0x8   : > { %p34_p0 = scmp.ge.s32.totalorder %s32_s20, 2  ;;  %p100_p1 = scmp.ne.s32.totalorder %s868_s14, %s864_s13 }
   0x9   : > { %p101_p2 = scmp.eq.s32.totalorder %s680_s18, 1  ;;  %p106_p3 = scmp.ne.s32.totalorder %s864_s13, %s860_s12 }
   0xa   : > { %s1108_s20 = smov (%p34_p0, %s32_s20), 0  ;;  %p107_p5 = scmp.eq.s32.totalorder %s681_s19, 1 }
   0xb   : > { %p950_p4 = por %p101_p2, %p100_p1  ;;  %s85_s23 = ssub.s32 %s876_s16, %s1108_s20 }
   0xc   : > { %p684_p6 = scmp.ge.s32.totalorder %s880_s17, 1  ;;  %p88_p7 = scmp.eq.s32.totalorder %s85_s23, 0 }
   0xd   : > { %p957_p8 = por %p107_p5, %p106_p3  ;;  %p166_p9 = scmp.lt.s32.totalorder %s880_s17, 3 }
   0xe   : > { %s963_s25 = scalar_select %p88_p7, %s868_s14, %s90_s21  }
   0xf   : > { %p167_p10 = pnand %p684_p6, %p166_p9 }
  0x10   : > { %p197_p11 = scmp.lt.s32.totalorder (!%p167_p10), %s872_s15, 1  ;;  %s889_s6 = smov (!%p167_p10), 16  }
  0x11   : > { %170 = sbr.rel (%p167_p10) target bundleno = 371 (0x173), region = 28  ;;  %s1033_s7 = sand.u32 (!%p167_p10), 1, %s864_s13  }
  0x12   : > { %s685_s8 = sshll.u32 (!%p167_p10), %s1033_s7, 3  ;;  %s696_s9 = sshll.u32 (!%p167_p10), %s872_s15, 3 }
  0x13   : > { %s555_s18 = scalar_lea.hbm (!%p167_p10), %s1098_s2, %s696_s9  ;;  %s570_s23 = scalar_lea.hbm (!%p167_p10), %s1099_s3, %s696_s9 }
  0x14   : > { %s559_s28 = sshll.u32 (!%p167_p10), %s555_s18, 4  ;;  %s196_s29 = scalar_lea.vmem (!%p167_p10), [#allocation4], %s685_s8  ;;  %s560_s28 = int_to_ptr.hbm [resolvable:$true] %s559_s28 }
  0x15   : > { %s574_s4 = sshll.u32 (!%p167_p10), %s570_s23, 4  ;;  %s784_s5 = sshra.s32 (!%p167_p10), %s560_s28, 4  ;;  %s1045_s4 = int_to_ptr.hbm [resolvable:$true] %s574_s4  ;;  %s785_s5 = int_to_ptr.hbm [resolvable:$true] %s784_s5 }
  0x16   : > { %v882_v0 = vmov 0   ;;  %s198_s26 = scalar_select %p197_p11, %s872_s15, 1  ;;  %v769_v2 = vld [vmem:[%s1097_s1] ss:$0 sm:$0xff]  ;;  %v883_v16 = vmov 2102212464  }
  0x17   : > { %768 = vset.pattern.permute.xlu0 %v882_v0  ;;  %v884_v18 = vmov 920167782   ;;  %v885_v21 = vmov 1326507024   ;;  %v886_v23 = vmov 683565275   ;;  %p791_p1 = scmp.lt.s32.totalorder %s785_s5, %s1098_s2 }
  0x18   : > { %s687_s27 = sshll.u32 %s198_s26, 3  ;;  %v887_v25 = vmov 2475754826   ;;  %v888_v28 = vmov 2131351028   ;;  %s189_s26 = scalar_lea.vmem [#allocation2], %s685_s8 }
  0x19   : > { %s203_s30 = scalar_lea.vmem %s1096_s0, %s687_s27  ;;  %s557_s27 = sshll.u32 %s189_s26, 4  ;;  %s558_s27 = int_to_ptr.vmem [resolvable:$true] %s557_s27 }
  0x1a   : > { %v204_v1 = vld [vmem:[%s203_s30] sm:$0xff]  ;;  %s572_s30 = sshll.u32 %s196_s29, 4  ;;  %s539_s15 = scalar_lea.sflag [#allocation3], %s1033_s7  ;;  %s1043_s30 = int_to_ptr.vmem [resolvable:$true] %s572_s30 }
  0x1b   : > { %208 = vperm.xlu0 %768, %v204_v1   ;;  %s790_s10 = scalar_lea.hbm %s1098_s2, 16 }
  0x8d   : > { %v209_v3 = vpop.permute.xlu0 %208 }
  0x8e   : > { %v974_v4 = vmul.f32 %v769_v2, %v209_v3 }
  0x90   : > { %v218_v5 = vand.u32 2139095040, %v974_v4  ;;  %v215_v8 = vand.u32 2147483647, %v974_v4  ;;  %vm217_vm12 = vcmp.lt.s32.totalorder %v974_v4, 0 }
  0x92   : > { %v219_v6 = vshrl.u32 %v218_v5, 23  ;;  %v222_v10 = vand.u32 8388607, %v215_v8  ;;  %vm216_vm13 = vcmp.le.f32.partialorder %v215_v8, 0.7853982 }
  0x94   : > { %v688_v7 = vadd.s32 4294967169, %v219_v6  ;;  %v223_v14 = vor.u32 8388608, %v222_v10 }
  0x96   : > { %v225_v9 = vadd.s32 1, %v688_v7  ;;  %v989_v35 = vshll.u32 %v223_v14, 8 }
  0x98   : > { %vm226_vm0 = vcmp.gt.s32.totalorder %v225_v9, 0  ;;  %v264_v45 = vand.u32 65535, %v989_v35  ;;  %v265_v47 = vshrl.u32 %v989_v35, 16 }
  0x99   : > { %v227_v11 = vsel %vm226_vm0, %v225_v9, 0 }
  0x9a   : > { %v229_v12 = vand.u32 31, %v227_v11  ;;  %v982_v15 = vshrl.u32 %v227_v11, 5 }
  0x9c   : > { %v980_v13 = vsub.s32 32, %v229_v12  ;;  %v241_v17 = vshll.u32 %v883_v16, %v229_v12  ;;  %v244_v19 = vshll.u32 %v884_v18, %v229_v12  ;;  %v232_v24 = vshll.u32 %v886_v23, %v229_v12 }
  0x9d   : > { %v235_v27 = vshll.u32 %v887_v25, %v229_v12  ;;  %v238_v30 = vshll.u32 %v888_v28, %v229_v12  ;;  %vm250_vm1 = vcmp.lt.s32.totalorder %v982_v15, 4  ;;  %vm247_vm2 = vcmp.lt.s32.totalorder %v982_v15, 1 }
  0x9e   : > { %v242_v20 = vshrl.u32 %v884_v18, %v980_v13  ;;  %v245_v22 = vshrl.u32 %v885_v21, %v980_v13  ;;  %v233_v26 = vshrl.u32 %v887_v25, %v980_v13  ;;  %v236_v29 = vshrl.u32 %v888_v28, %v980_v13 }
  0x9f   : > { %v239_v31 = vshrl.u32 %v883_v16, %v980_v13  ;;  %vm249_vm3 = vcmp.lt.s32.totalorder %v982_v15, 3  ;;  %vm248_vm4 = vcmp.lt.s32.totalorder %v982_v15, 2  ;;  %v231_v9 = vshrl.u32 %v886_v23, %v980_v13 }
  0xa0   : > { %v243_v32 = vor.u32 %v242_v20, %v241_v17  ;;  %v246_v33 = vor.u32 %v245_v22, %v244_v19  ;;  %v234_v34 = vor.u32 %v233_v26, %v232_v24  ;;  %v237_v36 = vor.u32 %v236_v29, %v235_v27 }
  0xa1   : > { %v240_v37 = vor.u32 %v239_v31, %v238_v30 }
  0xa2   : > { %v256_v38 = vsel %vm250_vm1, %v243_v32, 920167782  ;;  %v260_v39 = vsel %vm250_vm1, %v246_v33, 1326507024  ;;  %v255_v40 = vsel %vm247_vm2, %v234_v34, %v237_v36  ;;  %v251_v17 = vsel %vm247_vm2, %v231_v9, %v234_v34 }
  0xa3   : > { %v257_v41 = vsel %vm249_vm3, %v240_v37, %v256_v38  ;;  %v259_v42 = vsel %vm247_vm2, %v237_v36, %v240_v37  ;;  %v261_v44 = vsel %vm249_vm3, %v243_v32, %v260_v39  ;;  %v252_v5 = vsel %vm250_vm1, %v240_v37, 2102212464 }
  0xa4   : > { %v258_v43 = vsel %vm248_vm4, %v255_v40, %v257_v41  ;;  %v262_v46 = vsel %vm248_vm4, %v259_v42, %v261_v44  ;;  %v253_v18 = vsel %vm249_vm3, %v237_v36, %v252_v5 }
  0xa5   : > { %v288_v48 = vand.u32 65535, %v258_v43  ;;  %v289_v49 = vshrl.u32 %v258_v43, 16  ;;  %v266_v50 = vand.u32 65535, %v262_v46  ;;  %v267_v51 = vshrl.u32 %v262_v46, 16 }
  0xa6   : > { %v254_v23 = vsel %vm248_vm4, %v251_v17, %v253_v18  ;;  %vm358_vm4 = vweird.f32 %v974_v4 }
  0xa7   : > { %v291_v52 = vmul.u32 %v289_v49, %v264_v45  ;;  %v292_v53 = vmul.u32 %v288_v48, %v265_v47  ;;  %v269_v54 = vmul.u32 %v267_v51, %v264_v45  ;;  %v270_v55 = vmul.u32 %v266_v50, %v265_v47 }
  0xa8   : > { %v290_v56 = vmul.u32 %v288_v48, %v264_v45  ;;  %v268_v58 = vmul.u32 %v266_v50, %v264_v45  ;;  %v293_v60 = vmul.u32 %v289_v49, %v265_v47  ;;  %v271_v61 = vmul.u32 %v267_v51, %v265_v47 }
  0xa9   : > { %v294_v57 = vshll.u32 %v291_v52, 16  ;;  %v272_v59 = vshll.u32 %v269_v54, 16  ;;  %v296_v62 = vshll.u32 %v292_v53, 16  ;;  %v274_v1 = vshll.u32 %v270_v55, 16 }
  0xaa   : > { %v295_v14 = vshrl.u32 %v291_v52, 16  ;;  %v273_v19 = vshrl.u32 %v269_v54, 16  ;;  %v297_v21 = vshrl.u32 %v292_v53, 16  ;;  %v275_v24 = vshrl.u32 %v270_v55, 16 }
  0xab   : > { %vm298_vm5 = vc.u32 %v290_v56, %v294_v57  ;;  %v300_v63 = vadd.s32 %v294_v57, %v290_v56  ;;  %vm276_vm6 = vc.u32 %v268_v58, %v272_v59  ;;  %v278_v2 = vadd.s32 %v272_v59, %v268_v58 }
  0xac   : > { %v299_v3 = vsel %vm298_vm5, 1, %v882_v0  ;;  %v277_v6 = vsel %vm276_vm6, 1, %v882_v0  ;;  %v308_v28 = vmul.u32 %v989_v35, %v254_v23  ;;  %vm528_vm5 = vcmask 130048  }
  0xad   : > { %v301_v7 = vadd.s32 %v299_v3, %v293_v60  ;;  %vm302_vm7 = vc.u32 %v300_v63, %v296_v62  ;;  %v279_v10 = vadd.s32 %v277_v6, %v271_v61  ;;  %vm280_vm8 = vc.u32 %v278_v2, %v274_v1 }
  0xae   : > { %v303_v11 = vsel %vm302_vm7, 1, %v882_v0  ;;  %v281_v12 = vsel %vm280_vm8, 1, %v882_v0  ;;  %v304_v0 = vadd.s32 %v300_v63, %v296_v62  ;;  %vm530_vm6 = vcmask 261120  }
  0xaf   : > { %v305_v16 = vadd.s32 %v303_v11, %v301_v7  ;;  %v283_v20 = vadd.s32 %v281_v12, %v279_v10 }
  0xb1   : > { %v306_v22 = vadd.s32 %v305_v16, %v295_v14  ;;  %v284_v13 = vadd.s32 %v283_v20, %v273_v19 }
  0xb3   : > { %v307_v25 = vadd.s32 %v306_v22, %v297_v21  ;;  %v285_v26 = vadd.s32 %v284_v13, %v275_v24 }
  0xb5   : > { %v311_v27 = vadd.s32 1, %v307_v25  ;;  %vm310_vm9 = vc.u32 %v285_v26, %v304_v0  ;;  %v309_v40 = vadd.s32 %v304_v0, %v285_v26 }
  0xb7   : > { %v312_v29 = vsel %vm310_vm9, %v311_v27, %v307_v25 }
  0xb8   : > { %v313_v30 = vadd.s32 %v312_v29, %v308_v28 }
  0xba   : > { %v314_v31 = vadd.s32 536870912, %v313_v30 }
  0xbc   : > { %v315_v32 = vshrl.u32 %v314_v31, 30 }
  0xbe   : > { %v316_v33 = vshll.u32 %v315_v32, 30  ;;  %v339_v53 = vsub.s32 4, %v315_v32 }
  0xc0   : > { %v317_v34 = vsub.s32 %v313_v30, %v316_v33  ;;  %v340_v58 = vsel %vm217_vm12, %v339_v53, %v315_v32 }
  0xc1   : > { %v342_v61 = vsel %vm216_vm13, 0, %v340_v58 }
  0xc2   : > { %vm318_vm10 = vcmp.lt.s32.totalorder %v317_v34, 0  ;;  %v319_v36 = vsub.s32 0, %v317_v34  ;;  %v513_v3 = vadd.s32 3, %v342_v61  ;;  %v359_v9 = vand.u32 3, %v342_v61 }
  0xc4   : > { %v320_v37 = vsel %vm318_vm10, %v319_v36, %v317_v34  ;;  %v514_v10 = vand.u32 3, %v513_v3  ;;  %vm360_vm14 = vcmp.lt.s32.totalorder %v359_v9, 2  ;;  %vm361_vm15 = vcmp.eq.s32.totalorder %v359_v9, 0 }
  0xc5   : > { %v321_v38 = vclz %v320_v37  ;;  %vm364_vm3 = vcmp.eq.s32.totalorder %v359_v9, 2 }
  0xc6   : > { %vm515_vm0 = vcmp.lt.s32.totalorder %v514_v10, 2  ;;  %vm516_vm1 = vcmp.eq.s32.totalorder %v514_v10, 0  ;;  %vm519_vm2 = vcmp.eq.s32.totalorder %v514_v10, 2 }
  0xc7   : > { %v689_v39 = vadd.s32 4294967294, %v321_v38 }
  0xc9   : > { %vm690_vm11 = vcmp.lt.s32.totalorder %v689_v39, 0 }
  0xca   : > { %v324_v15 = vsel %vm690_vm11, 0, %v689_v39 }
  0xcb   : > { %v325_v41 = vsub.s32 32, %v324_v15  ;;  %v329_v42 = vsub.s32 4294967266, %v324_v15  ;;  %v326_v43 = vshll.u32 %v317_v34, %v324_v15 }
  0xcd   : > { %v327_v44 = vshrl.u32 %v309_v40, %v325_v41  ;;  %v330_v35 = vadd.s32 127, %v329_v42 }
  0xcf   : > { %v328_v45 = vor.u32 %v327_v44, %v326_v43  ;;  %v331_v46 = vshll.u32 %v330_v35, 23 }
  0xd1   : > { %v332_v47 = vor.u32 4788187, %v331_v46  ;;  %v335_v49 = vcvt.s32.f32 %v328_v45 }
  0xd3   : > { %v333_v48 = vand.u32 2147483647, %v332_v47 }
  0xd5   : > { %v336_v50 = vmul.f32 %v335_v49, %v333_v48 }
  0xd7   : > { %v337_v51 = vxor.u32 2147483648, %v336_v50 }
  0xd9   : > { %v338_v52 = vsel %vm217_vm12, %v337_v51, %v336_v50 }
  0xda   : > { %v341_v54 = vsel %vm216_vm13, %v974_v4, %v338_v52 }
  0xdb   : > { %v343_v55 = vmul.f32 %v341_v54, %v341_v54 }
  0xdd   : > { %v344_v56 = vmul.f32 -0.001358992, %v343_v55  ;;  %v351_v57 = vmul.f32 -0.00019511016, %v343_v55 }
  0xdf   : > { %v345_v59 = vadd.f32 0.041655596, %v344_v56  ;;  %v352_v60 = vadd.f32 0.008332121, %v351_v57 }
  0xe1   : > { %v346_v62 = vmul.f32 %v345_v59, %v343_v55  ;;  %v353_v63 = vmul.f32 %v352_v60, %v343_v55 }
  0xe3   : > { %v347_v1 = vadd.f32 -0.4999988, %v346_v62  ;;  %v354_v2 = vadd.f32 -0.16666654, %v353_v63 }
  0xe5   : > { %v348_v5 = vmul.f32 %v347_v1, %v343_v55  ;;  %v355_v6 = vmul.f32 %v354_v2, %v343_v55 }
  0xe7   : > { %v349_v7 = vadd.f32 1.0, %v348_v5  ;;  %v356_v8 = vadd.f32 1.0, %v355_v6 }
  0xe9   : > { %v357_v11 = vmul.f32 %v356_v8, %v341_v54  ;;  %v365_v12 = vxor.u32 2147483648, %v349_v7 }
  0xeb   : > { %v362_v14 = vxor.u32 2147483648, %v357_v11  ;;  %v521_v17 = vsel %vm519_vm2, %v365_v12, %v357_v11  ;;  %v366_v19 = vsel %vm364_vm3, %v365_v12, %v357_v11 }
  0xed   : > { %v518_v16 = vsel %vm516_vm1, %v349_v7, %v362_v14  ;;  %v363_v18 = vsel %vm361_vm15, %v349_v7, %v362_v14 }
  0xee   : > { %v522_v20 = vsel %vm515_vm0, %v518_v16, %v521_v17  ;;  %v367_v21 = vsel %vm360_vm14, %v363_v18, %v366_v19 }
  0xef   : > { %v523_v22 = vsel %vm358_vm4, nan, %v522_v20  ;;  %v368_v24 = vsel %vm358_vm4, nan, %v367_v21 }
  0xf0   : > { %533 = vrot.lane.b32.xlu1 %v523_v22, %s889_s6  ;;  %525 = vrot.lane.b32.xlu0 %v368_v24, %s889_s6  ;;  %s786_s6 = scalar_lea.hbm %s785_s5, 8 }
  0xf1   : > { %p787_p12 = scmp.ne.s32.totalorder %s785_s5, %s786_s6  ;;  %p792_p2 = scmp.lt.s32.totalorder %s790_s10, %s786_s6 }
  0xf3   : > { %p788_p13 = pnand %p787_p12, %p950_p4  ;;  %p793_p3 = por %p792_p2, %p791_p1 }
  0xf5   : > { %p789_p0 = pneg %p788_p13 }
  0xf7   : > { %p794_p5 = pnand %p793_p3, %p789_p0 }
 0x162   : > { %v534_v4 = vpop.permute.xlu1 %533  ;;  %v526_v13 = vpop.permute.xlu0 %525 }
 0x163   : > { %v536_v23 = vsel %vm528_vm5, %v523_v22, %v534_v4  ;;  %v529_v25 = vsel %vm528_vm5, %v368_v24, %v526_v13 }
 0x164   : > { %531 = vst.msk [vmem:[%s189_s26] sm:$0xff] %vm530_vm6, %v529_v25 }
 0x165   : > { %797 = shalt.err (!%p794_p5)
}
 0x166   : > { %700 = dma.vmem_to_hbm [thread:$0]  (%p950_p4), %s558_s27, 128, %s560_s28, %s539_s15   ;;  %537 = vst.msk [vmem:[%s196_s29] sm:$0xff] %vm530_vm6, %v536_v23 }
 0x167   : > { %s544_s19 = scalar_lea.sflag [#allocation5], %s1033_s7  ;;  %s812_s21 = sshra.s32 %s1045_s4, 4  ;;  %s813_s21 = int_to_ptr.hbm [resolvable:$true] %s812_s21 }
 0x168   : > { %s814_s23 = scalar_lea.hbm %s813_s21, 8  ;;  %s818_s6 = scalar_lea.hbm %s1099_s3, 16 }
 0x169   : > { %p815_p6 = scmp.ne.s32.totalorder %s813_s21, %s814_s23  ;;  %p819_p10 = scmp.lt.s32.totalorder %s813_s21, %s1099_s3 }
 0x16a   : > { %p820_p11 = scmp.lt.s32.totalorder %s818_s6, %s814_s23 }
 0x16b   : > { %p816_p7 = pnand %p815_p6, %p950_p4 }
 0x16c   : > { %p821_p12 = por %p820_p11, %p819_p10 }
 0x16d   : > { %p817_p9 = pneg %p816_p7 }
 0x16f   : > { %p822_p13 = pnand %p821_p12, %p817_p9 }
 0x171   : > { %825 = shalt.err (!%p822_p13)
}
 0x172   : > { %701 = dma.vmem_to_hbm [thread:$0]  (%p950_p4), %s1043_s30, 128, %s1045_s4, %s544_s19  }
 0x173 PF: > { %p711_p0 = scmp.ge.s32.totalorder %s880_s17, 2  ;;  %s586_s7 = sand.u32 1, %s860_s12  }
 0x174   : > { %s587_s27 = scalar_lea.sflag [#allocation3], %s586_s7 }
 0x175   : > { %p705_p1 = pnand %p711_p0, %p957_p8 }
 0x177   : > { %p706_p2 = pneg %p705_p1 }
 0x179   : > { %851 = dma.done.wait (%p706_p2), %s587_s27, 128  }
 0x17a   : > { %853 = vsyncadd (%p706_p2), %s587_s27, 4294967168  ;;  %s597_s28 = scalar_lea.sflag [#allocation5], %s586_s7 }
 0x17b   : > { %855 = dma.done.wait (%p706_p2), %s597_s28, 128  }
 0x17c   : > { %857 = vsyncadd (%p706_p2), %s597_s28, 4294967168  ;;  %s20_s17 = sadd.s32 1, %s880_s17   ;;  %s1102_s12 = smov %s864_s13 }
 0x17d   : > { %p17_p3 = scmp.ge.s32.totalorder %s20_s17, 4   ;;  %s1103_s13 = smov %s868_s14 }
 0x17e   : > { %s1104_s14 = smov %s963_s25  ;;  %s1105_s15 = smov %s876_s16 }
 0x17f   : > { %s1106_s16 = smov %s1108_s20  ;;  %19 = sbr.rel (!%p17_p3) target bundleno = 6 (0x6), region = 80 }
 0x184   :  { %603 = vsyncpa [#allocation3], 1 }
 0x185   :  { %605 = vsyncpa [#allocation3 + $0x1], 1 }
 0x186   :  { %606 = vsyncpa [#allocation5], 1 }
 0x187   :  { %608 = vsyncpa [#allocation5 + $0x1], 1 }

</bundles_post_ra>
